<compile_context>
chip_gen: v6e
topology: v6e:2x2x1
jax: 0.10.0
libtpu: 0.0.40
codegen_flags: <defaults>
</compile_context>

<pallas_src>
import functools

import numpy as np

import jax
import jax.numpy as jnp
from jax.experimental import pallas as pl
from jax.experimental.pallas import tpu as pltpu


def _round_up(x, m):
    return ((x + m - 1) // m) * m


def _gcn_geometry(n, emb_size):
    """Generation-tuned tiling for the block-sparse (N, N) @ (N, D) SpMM."""
    d_pad = _round_up(emb_size, 128)
    try:
        info = pltpu.get_tpu_info()
        vmem = int(getattr(info, "vmem_capacity_bytes"))
    except Exception:
        vmem = 64 * 1024 * 1024
    if vmem >= 100 * 1024 * 1024:        # v5e / v6e: 128 MiB VMEM
        tm_pref, tk_pref, vmem_limit = 2048, 2048, 96 * 1024 * 1024
    else:                                 # v7x: 64 MiB per TensorCore
        tm_pref, tk_pref, vmem_limit = 1024, 2048, 48 * 1024 * 1024

    if n <= 2048:
        # Small graph: one block per axis, no per-step pipeline overhead.
        n_pad = _round_up(n, 128)
        tm = tk = n_pad
    else:
        step = max(tm_pref, tk_pref)
        n_pad = _round_up(n, step)
        tm, tk = tm_pref, tk_pref

    # Keep E resident in VMEM when it comfortably fits next to the adj tiles.
    resident = (n_pad * d_pad * 2) <= 8 * 1024 * 1024
    return dict(n_pad=n_pad, d_pad=d_pad, tm=tm, tk=tk,
                vmem_limit=vmem_limit, resident=resident)


# ----------------------------------------------------------------------------
# Kernel 1: block-sparse LightGCN propagation step with fused layer epilogue.
#   scalar prefetch: blk_rows/blk_cols/blk_first/blk_last (SMEM, i32)
#   adj_blocks: (num_blocks, tm, tk) bf16   (only nonzero blocks, compacted)
#   emb:        (n_pad, d_pad) bf16         (resident) or (tk, d_pad) blocked
#   prev_sum:   (n_pad, d_pad) f32          running layer sum
# Outputs:
#   sum:  prev_sum + A_norm @ emb           (f32)
#   next: A_norm @ emb                      (bf16, next-layer input)
# ----------------------------------------------------------------------------
def _spmm_fused_kernel(rows_ref, cols_ref, first_ref, last_ref,
                       adj_ref, emb_ref, prevsum_ref,
                       sum_ref, next_ref, acc_ref, *, resident, tk):
    g = pl.program_id(0)

    @pl.when(first_ref[g] == 1)
    def _init():
        acc_ref[...] = jnp.zeros_like(acc_ref)

    if resident:
        if tk == emb_ref.shape[0]:
            e = emb_ref[...]
        else:
            off = pl.multiple_of(cols_ref[g] * tk, tk)
            e = emb_ref[pl.ds(off, tk), :]
    else:
        e = emb_ref[...]

    acc_ref[...] += jnp.dot(adj_ref[0], e, preferred_element_type=jnp.float32)

    @pl.when(last_ref[g] == 1)
    def _finalize():
        sum_ref[...] = prevsum_ref[...] + acc_ref[...]
        next_ref[...] = acc_ref[...].astype(next_ref.dtype)


def spmm_layer(adj_blocks, emb_bf16, prev_sum,
               blk_rows, blk_cols, blk_first, blk_last, *, geom):
    tm, tk = geom["tm"], geom["tk"]
    n_pad, d_pad = prev_sum.shape
    num_blocks = adj_blocks.shape[0]
    resident = geom["resident"]

    if resident:
        emb_spec = pl.BlockSpec((n_pad, d_pad), lambda g, r, c, f, l: (0, 0))
    else:
        emb_spec = pl.BlockSpec((tk, d_pad), lambda g, r, c, f, l: (c[g], 0))
    row_spec = lambda g, r, c, f, l: (r[g], 0)

    kernel = functools.partial(_spmm_fused_kernel, resident=resident, tk=tk)
    # TODO(synk): 2-level (row-chunk "parallel" x block "arbitrary") grid to
    # recover megacore sharding on v7x; the flat 1-D list maximizes skipping.
    return pl.pallas_call(
        kernel,
        grid_spec=pltpu.PrefetchScalarGridSpec(
            num_scalar_prefetch=4,
            grid=(num_blocks,),
            in_specs=[
                pl.BlockSpec((1, tm, tk), lambda g, r, c, f, l: (g, 0, 0)),
                emb_spec,
                pl.BlockSpec((tm, d_pad), row_spec),
            ],
            out_specs=[
                pl.BlockSpec((tm, d_pad), row_spec),
                pl.BlockSpec((tm, d_pad), row_spec),
            ],
            scratch_shapes=[pltpu.VMEM((tm, d_pad), jnp.float32)],
        ),
        out_shape=(
            jax.ShapeDtypeStruct((n_pad, d_pad), jnp.float32),
            jax.ShapeDtypeStruct((n_pad, d_pad), jnp.bfloat16),
        ),
        compiler_params=pltpu.CompilerParams(
            dimension_semantics=("arbitrary",),
            vmem_limit_bytes=geom["vmem_limit"],
        ),
    )(blk_rows, blk_cols, blk_first, blk_last, adj_blocks, emb_bf16, prev_sum)


# ----------------------------------------------------------------------------
# Kernel 2: fused predictor (Linear, W pre-transposed) + momentum target blend
#   x:    (R_pad, D_pad) f32   gathered online embeddings (users ++ items)
#   hist: (R_pad, D_pad) f32   gathered historical target embeddings
#   wt:   (D_pad, D_pad) f32   W.T zero-padded      (out = x @ W.T + b)
#   b:    (1, D_pad)     f32   bias zero-padded
# Outputs: p = predictor(x), target = hist * m + x * (1 - m)
# ----------------------------------------------------------------------------
def _predict_blend_kernel(x_ref, hist_ref, wt_ref, b_ref, p_ref, tgt_ref, *,
                          momentum):
    x = x_ref[...]
    p_ref[...] = jnp.dot(x, wt_ref[...],
                         preferred_element_type=jnp.float32) + b_ref[...]
    tgt_ref[...] = hist_ref[...] * momentum + x * (1.0 - momentum)


def predict_and_blend(x, hist, wt, bias, momentum, *, tb):
    rows_pad, d_pad = x.shape
    return pl.pallas_call(
        functools.partial(_predict_blend_kernel, momentum=float(momentum)),
        grid_spec=pltpu.PrefetchScalarGridSpec(
            num_scalar_prefetch=0,
            grid=(rows_pad // tb,),
            in_specs=[
                pl.BlockSpec((tb, d_pad), lambda i: (i, 0)),
                pl.BlockSpec((tb, d_pad), lambda i: (i, 0)),
                pl.BlockSpec((d_pad, d_pad), lambda i: (0, 0)),
                pl.BlockSpec((1, d_pad), lambda i: (0, 0)),
            ],
            out_specs=(
                pl.BlockSpec((tb, d_pad), lambda i: (i, 0)),
                pl.BlockSpec((tb, d_pad), lambda i: (i, 0)),
            ),
        ),
        out_shape=(
            jax.ShapeDtypeStruct((rows_pad, d_pad), jnp.float32),
            jax.ShapeDtypeStruct((rows_pad, d_pad), jnp.float32),
        ),
        compiler_params=pltpu.CompilerParams(
            dimension_semantics=("parallel",),
        ),
    )(x, hist, wt, bias)


# ----------------------------------------------------------------------------
# SelfCF forward (functional: also returns the updated target histories)
# ----------------------------------------------------------------------------
def selfcf_forward(users, items, u_hist_pad, i_hist_pad, params, *,
                   user_num, emb_size, n_layers, momentum, geom):
    d = emb_size

    # --- LightGCN propagation: fused running layer-sum + bf16 recast --------
    sum_emb = params["ego_emb"]                      # layer-0 term (f32)
    cur = params["ego_emb"].astype(jnp.bfloat16)
    for _ in range(n_layers):                        # static unroll, small
        sum_emb, cur = spmm_layer(
            params["adj_blocks"], cur, sum_emb,
            params["blk_rows"], params["blk_cols"],
            params["blk_first"], params["blk_last"], geom=geom)
    inv = 1.0 / float(n_layers + 1)

    # --- gather minibatch rows; fold the layer-mean scale into O(batch) -----
    # TODO(synk): fuse these gathers + the history scatter into the predictor
    # kernel (scalar-prefetched row indices + input_output_aliases).
    u_sel = sum_emb[users] * inv                     # (Bu, D_pad) = u_online
    i_sel = sum_emb[user_num + items] * inv          # (Bi, D_pad) = i_online
    u_hist_rows = u_hist_pad[users]
    i_hist_rows = i_hist_pad[items]

    bu, bi = users.shape[0], items.shape[0]
    rows = bu + bi
    if rows <= 512:
        rows_pad = _round_up(rows, 8)
        tb = rows_pad
    else:
        rows_pad = _round_up(rows, 512)
        tb = 512

    x = jnp.pad(jnp.concatenate([u_sel, i_sel], axis=0),
                ((0, rows_pad - rows), (0, 0)))
    h = jnp.pad(jnp.concatenate([u_hist_rows, i_hist_rows], axis=0),
                ((0, rows_pad - rows), (0, 0)))

    p, tgt = predict_and_blend(x, h, params["pred_wt"], params["pred_b"],
                               momentum, tb=tb)

    p_u, p_i = p[:bu, :d], p[bu:rows, :d]
    u_target, i_target = tgt[:bu, :d], tgt[bu:rows, :d]

    # history <- online (donated inputs => in-place scatter of O(batch) rows)
    new_u_hist = u_hist_pad.at[users].set(u_sel)
    new_i_hist = i_hist_pad.at[items].set(i_sel)
    return p_u, u_target, p_i, i_target, new_u_hist, new_i_hist


# ----------------------------------------------------------------------------
# Deterministic synthetic setup.  All padding / transposes / block-sparse
# structure extraction happens ONCE here, not per forward.
# ----------------------------------------------------------------------------
def build_params(key, user_num, item_num, emb_size, geom, num_edges=32):
    n = user_num + item_num
    n_pad, d_pad = geom["n_pad"], geom["d_pad"]
    tm, tk = geom["tm"], geom["tk"]
    k = jax.random.split(key, 7)

    # synthetic bipartite graph -> symmetric normalized adjacency
    u_idx = jax.random.randint(k[0], (num_edges,), 0, user_num)
    i_idx = jax.random.randint(k[1], (num_edges,), 0, item_num)
    adj = jnp.zeros((n, n), jnp.float32).at[u_idx, i_idx + user_num].set(1.0)
    adj = adj + adj.T
    rowsum = adj.sum(axis=1)
    d_inv = jnp.where(rowsum > 0, rowsum, 1.0) ** -0.5
    d_inv = jnp.where(rowsum > 0, d_inv, 0.0)
    norm_adj = d_inv[:, None] * adj * d_inv[None, :]

    # ---- block-sparse structure (host-side, one time) -----------------------
    a_pad = np.zeros((n_pad, n_pad), np.float32)
    a_pad[:n, :n] = np.asarray(norm_adj)
    nb_r, nb_c = n_pad // tm, n_pad // tk
    nz = np.abs(a_pad).reshape(nb_r, tm, nb_c, tk).sum(axis=(1, 3)) > 0
    rows, cols, first, last, blocks = [], [], [], [], []
    for i in range(nb_r):
        ks = np.nonzero(nz[i])[0]
        if ks.size == 0:
            ks = np.array([0])   # dummy zero block so row-block i still inits
        for j, c in enumerate(ks):
            rows.append(i)
            cols.append(int(c))
            first.append(int(j == 0))
            last.append(int(j == ks.size - 1))
            blocks.append(a_pad[i * tm:(i + 1) * tm, c * tk:(c + 1) * tk])
    adj_blocks = jnp.asarray(np.stack(blocks, axis=0), dtype=jnp.bfloat16)
    blk_rows = jnp.asarray(np.array(rows, np.int32))
    blk_cols = jnp.asarray(np.array(cols, np.int32))
    blk_first = jnp.asarray(np.array(first, np.int32))
    blk_last = jnp.asarray(np.array(last, np.int32))

    # ---- embeddings / predictor / histories (pre-padded, pre-transposed) ----
    bound = 1.0 / (emb_size ** 0.5)
    user_emb = 0.1 * jax.random.normal(k[2], (user_num, emb_size), jnp.float32)
    item_emb = 0.1 * jax.random.normal(k[3], (item_num, emb_size), jnp.float32)
    ego_emb = jnp.pad(jnp.concatenate([user_emb, item_emb], axis=0),
                      ((0, n_pad - n), (0, d_pad - emb_size)))

    pred_w = jax.random.uniform(k[4], (emb_size, emb_size), jnp.float32,
                                -bound, bound)
    pred_b = jax.random.uniform(k[5], (emb_size,), jnp.float32, -bound, bound)
    pred_wt = jnp.zeros((d_pad, d_pad), jnp.float32).at[
        :emb_size, :emb_size].set(pred_w.T)
    pred_b_pad = jnp.zeros((1, d_pad), jnp.float32).at[0, :emb_size].set(pred_b)

    u_hist = jnp.pad(
        jax.random.normal(k[6], (user_num, emb_size), jnp.float32),
        ((0, 0), (0, d_pad - emb_size)))
    i_hist = jnp.pad(
        jax.random.normal(jax.random.fold_in(k[6], 1),
                          (item_num, emb_size), jnp.float32),
        ((0, 0), (0, d_pad - emb_size)))

    params = dict(adj_blocks=adj_blocks, blk_rows=blk_rows, blk_cols=blk_cols,
                  blk_first=blk_first, blk_last=blk_last, ego_emb=ego_emb,
                  pred_wt=pred_wt, pred_b=pred_b_pad)
    return params, u_hist, i_hist


if __name__ == "__main__":
    user_num, item_num, emb_size = 8, 16, 32
    n_layers, momentum = 1, 0.05

    geom = _gcn_geometry(user_num + item_num, emb_size)
    key = jax.random.PRNGKey(0)
    params, u_hist, i_hist = build_params(key, user_num, item_num, emb_size,
                                          geom)

    users = jnp.array([0, 3, 5, 7], dtype=jnp.int32)
    items = jnp.array([1, 4, 9, 15], dtype=jnp.int32)

    fwd = jax.jit(
        functools.partial(selfcf_forward, user_num=user_num,
                          emb_size=emb_size, n_layers=n_layers,
                          momentum=momentum, geom=geom),
        donate_argnums=(2, 3))
    out = jax.block_until_ready(fwd(users, items, u_hist, i_hist, params))

    p_u, u_target, p_i, i_target, new_u_hist, new_i_hist = out
    d_pad = geom["d_pad"]
    assert p_u.shape == (users.shape[0], emb_size)
    assert u_target.shape == (users.shape[0], emb_size)
    assert p_i.shape == (items.shape[0], emb_size)
    assert i_target.shape == (items.shape[0], emb_size)
    assert new_u_hist.shape == (user_num, d_pad)
    assert new_i_hist.shape == (item_num, d_pad)
    assert bool(jnp.all(jnp.isfinite(p_u))) and bool(jnp.all(jnp.isfinite(p_i)))
    assert bool(jnp.all(jnp.isfinite(u_target))) and bool(
        jnp.all(jnp.isfinite(i_target)))
    assert bool(jnp.all(jnp.isfinite(new_u_hist))) and bool(
        jnp.all(jnp.isfinite(new_i_hist)))
    print("KERNEL_OK")
</pallas_src>

<mosaic_0001>
module attributes {stable_mosaic.version = 11 : i64} {
  func.func @_spmm_fused_kernel(%arg0: i32, %arg1: memref<1xi32, #tpu.memory_space<smem>>, %arg2: memref<1xi32, #tpu.memory_space<smem>>, %arg3: memref<1xi32, #tpu.memory_space<smem>>, %arg4: memref<1xi32, #tpu.memory_space<smem>>, %arg5: memref<1x128x128xbf16, #tpu.memory_space<vmem>>, %arg6: memref<128x128xbf16, #tpu.memory_space<vmem>>, %arg7: memref<128x128xf32, #tpu.memory_space<vmem>>, %arg8: memref<128x128xf32, #tpu.memory_space<vmem>>, %arg9: memref<128x128xbf16, #tpu.memory_space<vmem>>, %arg10: memref<128x128xf32, #tpu.memory_space<vmem>>) attributes {dimension_semantics = [#tpu.dimension_semantics<arbitrary>], iteration_bounds = array<i64: 1>, scalar_prefetch = 4 : i64, scratch_operands = 1 : i64, tpu.core_type = #tpu.core_type<tc>, window_params = [{transform_indices = @transform_0, window_bounds = array<i64: 1, 128, 128>}, {pipeline_mode = #tpu.pipeline_mode<synchronous>, transform_indices = @transform_1, window_bounds = array<i64: 128, 128>}, {transform_indices = @transform_2, window_bounds = array<i64: 128, 128>}, {transform_indices = @transform_3, window_bounds = array<i64: 128, 128>}, {transform_indices = @transform_4, window_bounds = array<i64: 128, 128>}]} {
    %0 = arith.index_cast %arg0 : i32 to index
    %1 = memref.load %arg3[%0] : memref<1xi32, #tpu.memory_space<smem>>
    %c1_i32 = arith.constant 1 : i32
    %2 = arith.cmpi eq, %1, %c1_i32 : i32
    %3 = arith.extui %2 : i1 to i32
    %c0_i32 = arith.constant 0 : i32
    %4 = arith.cmpi ne, %3, %c0_i32 : i32
    scf.if %4 {
      %cst_10 = arith.constant 0.000000e+00 : f32
      %17 = vector.broadcast %cst_10 : f32 to vector<128x128xf32>
      %c0_11 = arith.constant 0 : index
      %c0_12 = arith.constant 0 : index
      %18 = vector.load %arg10[%c0_11, %c0_12] : memref<128x128xf32, #tpu.memory_space<vmem>>, vector<128x128xf32>
      tpu.vector_store %arg10[%c0_11, %c0_12], %17 {strides = array<i32>} : memref<128x128xf32, #tpu.memory_space<vmem>>, vector<128x128xf32>,
    } else {
    }
    %c0 = arith.constant 0 : index
    %c0_0 = arith.constant 0 : index
    %5 = vector.load %arg6[%c0, %c0_0] : memref<128x128xbf16, #tpu.memory_space<vmem>>, vector<128x128xbf16>
    %c0_1 = arith.constant 0 : index
    %c0_2 = arith.constant 0 : index
    %6 = vector.load %arg10[%c0_1, %c0_2] : memref<128x128xf32, #tpu.memory_space<vmem>>, vector<128x128xf32>
    %c0_3 = arith.constant 0 : index
    %c0_4 = arith.constant 0 : index
    %c0_5 = arith.constant 0 : index
    %7 = vector.load %arg5[%c0_3, %c0_4, %c0_5] : memref<1x128x128xbf16, #tpu.memory_space<vmem>>, vector<1x128x128xbf16>
    %8 = vector.shape_cast %7 : vector<1x128x128xbf16> to vector<128x128xbf16>
    %cst = arith.constant dense<0.000000e+00> : vector<128x128xf32>
    %9 = tpu.matmul %8, %5, %cst {dimension_numbers = #tpu.dot_dimension_numbers<[1], [0], [0], [1], [0, 0, 1, 1], [], []>} : vector<128x128xbf16>, vector<128x128xbf16>, vector<128x128xf32> -> vector<128x128xf32>
    %10 = arith.addf %6, %9 : vector<128x128xf32>
    %c0_6 = arith.constant 0 : index
    %c0_7 = arith.constant 0 : index
    %11 = vector.load %arg10[%c0_6, %c0_7] : memref<128x128xf32, #tpu.memory_space<vmem>>, vector<128x128xf32>
    tpu.vector_store %arg10[%c0_6, %c0_7], %10 {strides = array<i32>} : memref<128x128xf32, #tpu.memory_space<vmem>>, vector<128x128xf32>,
    %12 = arith.index_cast %arg0 : i32 to index
    %13 = memref.load %arg4[%12] : memref<1xi32, #tpu.memory_space<smem>>
    %c1_i32_8 = arith.constant 1 : i32
    %14 = arith.cmpi eq, %13, %c1_i32_8 : i32
    %15 = arith.extui %14 : i1 to i32
    %c0_i32_9 = arith.constant 0 : i32
    %16 = arith.cmpi ne, %15, %c0_i32_9 : i32
    scf.if %16 {
      %c0_10 = arith.constant 0 : index
      %c0_11 = arith.constant 0 : index
      %17 = vector.load %arg7[%c0_10, %c0_11] : memref<128x128xf32, #tpu.memory_space<vmem>>, vector<128x128xf32>
      %c0_12 = arith.constant 0 : index
      %c0_13 = arith.constant 0 : index
      %18 = vector.load %arg10[%c0_12, %c0_13] : memref<128x128xf32, #tpu.memory_space<vmem>>, vector<128x128xf32>
      %19 = arith.addf %17, %18 : vector<128x128xf32>
      %c0_14 = arith.constant 0 : index
      %c0_15 = arith.constant 0 : index
      %20 = vector.load %arg8[%c0_14, %c0_15] : memref<128x128xf32, #tpu.memory_space<vmem>>, vector<128x128xf32>
      tpu.vector_store %arg8[%c0_14, %c0_15], %19 {strides = array<i32>} : memref<128x128xf32, #tpu.memory_space<vmem>>, vector<128x128xf32>,
      %c0_16 = arith.constant 0 : index
      %c0_17 = arith.constant 0 : index
      %21 = vector.load %arg10[%c0_16, %c0_17] : memref<128x128xf32, #tpu.memory_space<vmem>>, vector<128x128xf32>
      %22 = arith.truncf %21 : vector<128x128xf32> to vector<128x128xbf16>
      %c0_18 = arith.constant 0 : index
      %c0_19 = arith.constant 0 : index
      %23 = vector.load %arg9[%c0_18, %c0_19] : memref<128x128xbf16, #tpu.memory_space<vmem>>, vector<128x128xbf16>
      tpu.vector_store %arg9[%c0_18, %c0_19], %22 {strides = array<i32>} : memref<128x128xbf16, #tpu.memory_space<vmem>>, vector<128x128xbf16>,
    } else {
    }
    return
  }
  func.func @transform_0(%arg0: i32, %arg1: memref<1xi32, #tpu.memory_space<smem>>, %arg2: memref<1xi32, #tpu.memory_space<smem>>, %arg3: memref<1xi32, #tpu.memory_space<smem>>, %arg4: memref<1xi32, #tpu.memory_space<smem>>) -> (i32, i32, i32) {
    %c0_i32 = arith.constant 0 : i32
    %c0_i32_0 = arith.constant 0 : i32
    %c0_i32_1 = arith.constant 0 : i32
    return %arg0, %c0_i32, %c0_i32_0 : i32, i32, i32
  }
  func.func @transform_1(%arg0: i32, %arg1: memref<1xi32, #tpu.memory_space<smem>>, %arg2: memref<1xi32, #tpu.memory_space<smem>>, %arg3: memref<1xi32, #tpu.memory_space<smem>>, %arg4: memref<1xi32, #tpu.memory_space<smem>>) -> (i32, i32) {
    %c0_i32 = arith.constant 0 : i32
    %c0_i32_0 = arith.constant 0 : i32
    %c0_i32_1 = arith.constant 0 : i32
    return %c0_i32, %c0_i32_0 : i32, i32
  }
  func.func @transform_2(%arg0: i32, %arg1: memref<1xi32, #tpu.memory_space<smem>>, %arg2: memref<1xi32, #tpu.memory_space<smem>>, %arg3: memref<1xi32, #tpu.memory_space<smem>>, %arg4: memref<1xi32, #tpu.memory_space<smem>>) -> (i32, i32) {
    %0 = arith.index_cast %arg0 : i32 to index
    %1 = memref.load %arg1[%0] : memref<1xi32, #tpu.memory_space<smem>>
    %c0_i32 = arith.constant 0 : i32
    %c0_i32_0 = arith.constant 0 : i32
    return %1, %c0_i32 : i32, i32
  }
  func.func @transform_3(%arg0: i32, %arg1: memref<1xi32, #tpu.memory_space<smem>>, %arg2: memref<1xi32, #tpu.memory_space<smem>>, %arg3: memref<1xi32, #tpu.memory_space<smem>>, %arg4: memref<1xi32, #tpu.memory_space<smem>>) -> (i32, i32) {
    %0 = arith.index_cast %arg0 : i32 to index
    %1 = memref.load %arg1[%0] : memref<1xi32, #tpu.memory_space<smem>>
    %c0_i32 = arith.constant 0 : i32
    %c0_i32_0 = arith.constant 0 : i32
    return %1, %c0_i32 : i32, i32
  }
  func.func @transform_4(%arg0: i32, %arg1: memref<1xi32, #tpu.memory_space<smem>>, %arg2: memref<1xi32, #tpu.memory_space<smem>>, %arg3: memref<1xi32, #tpu.memory_space<smem>>, %arg4: memref<1xi32, #tpu.memory_space<smem>>) -> (i32, i32) {
    %0 = arith.index_cast %arg0 : i32 to index
    %1 = memref.load %arg1[%0] : memref<1xi32, #tpu.memory_space<smem>>
    %c0_i32 = arith.constant 0 : i32
    %c0_i32_0 = arith.constant 0 : i32
    return %1, %c0_i32 : i32, i32
  }
}

module attributes {stable_mosaic.version = 11 : i64} {
  func.func @_predict_blend_kernel(%arg0: i32, %arg1: memref<8x128xf32, #tpu.memory_space<vmem>>, %arg2: memref<8x128xf32, #tpu.memory_space<vmem>>, %arg3: memref<128x128xf32, #tpu.memory_space<vmem>>, %arg4: memref<1x128xf32, #tpu.memory_space<vmem>>, %arg5: memref<8x128xf32, #tpu.memory_space<vmem>>, %arg6: memref<8x128xf32, #tpu.memory_space<vmem>>) attributes {dimension_semantics = [#tpu.dimension_semantics<parallel>], iteration_bounds = array<i64: 1>, scalar_prefetch = 0 : i64, scratch_operands = 0 : i64, tpu.core_type = #tpu.core_type<tc>, window_params = [{transform_indices = @transform_0, window_bounds = array<i64: 8, 128>}, {transform_indices = @transform_1, window_bounds = array<i64: 8, 128>}, {pipeline_mode = #tpu.pipeline_mode<synchronous>, transform_indices = @transform_2, window_bounds = array<i64: 128, 128>}, {pipeline_mode = #tpu.pipeline_mode<synchronous>, transform_indices = @transform_3, window_bounds = array<i64: 1, 128>}, {transform_indices = @transform_4, window_bounds = array<i64: 8, 128>}, {transform_indices = @transform_5, window_bounds = array<i64: 8, 128>}]} {
    %c0 = arith.constant 0 : index
    %c0_0 = arith.constant 0 : index
    %0 = vector.load %arg1[%c0, %c0_0] : memref<8x128xf32, #tpu.memory_space<vmem>>, vector<8x128xf32>
    %c0_1 = arith.constant 0 : index
    %c0_2 = arith.constant 0 : index
    %1 = vector.load %arg3[%c0_1, %c0_2] : memref<128x128xf32, #tpu.memory_space<vmem>>, vector<128x128xf32>
    %cst = arith.constant dense<0.000000e+00> : vector<8x128xf32>
    %2 = tpu.matmul %0, %1, %cst {dimension_numbers = #tpu.dot_dimension_numbers<[1], [0], [0], [1], [0, 0, 1, 1], [], []>} : vector<8x128xf32>, vector<128x128xf32>, vector<8x128xf32> -> vector<8x128xf32>
    %c0_3 = arith.constant 0 : index
    %c0_4 = arith.constant 0 : index
    %3 = vector.load %arg4[%c0_3, %c0_4] : memref<1x128xf32, #tpu.memory_space<vmem>>, vector<1x128xf32>
    %4 = vector.broadcast %3 : vector<1x128xf32> to vector<8x128xf32>
    %5 = arith.addf %2, %4 : vector<8x128xf32>
    %c0_5 = arith.constant 0 : index
    %c0_6 = arith.constant 0 : index
    %6 = vector.load %arg5[%c0_5, %c0_6] : memref<8x128xf32, #tpu.memory_space<vmem>>, vector<8x128xf32>
    tpu.vector_store %arg5[%c0_5, %c0_6], %5 {strides = array<i32>} : memref<8x128xf32, #tpu.memory_space<vmem>>, vector<8x128xf32>,
    %c0_7 = arith.constant 0 : index
    %c0_8 = arith.constant 0 : index
    %7 = vector.load %arg2[%c0_7, %c0_8] : memref<8x128xf32, #tpu.memory_space<vmem>>, vector<8x128xf32>
    %cst_9 = arith.constant 5.000000e-02 : f32
    %8 = vector.broadcast %cst_9 : f32 to vector<8x128xf32>
    %9 = arith.mulf %7, %8 : vector<8x128xf32>
    %cst_10 = arith.constant 0.949999988 : f32
    %10 = vector.broadcast %cst_10 : f32 to vector<8x128xf32>
    %11 = arith.mulf %0, %10 : vector<8x128xf32>
    %12 = arith.addf %9, %11 : vector<8x128xf32>
    %c0_11 = arith.constant 0 : index
    %c0_12 = arith.constant 0 : index
    %13 = vector.load %arg6[%c0_11, %c0_12] : memref<8x128xf32, #tpu.memory_space<vmem>>, vector<8x128xf32>
    tpu.vector_store %arg6[%c0_11, %c0_12], %12 {strides = array<i32>} : memref<8x128xf32, #tpu.memory_space<vmem>>, vector<8x128xf32>,
    return
  }
  func.func @transform_0(%arg0: i32) -> (i32, i32) {
    %c0_i32 = arith.constant 0 : i32
    %c0_i32_0 = arith.constant 0 : i32
    return %arg0, %c0_i32 : i32, i32
  }
  func.func @transform_1(%arg0: i32) -> (i32, i32) {
    %c0_i32 = arith.constant 0 : i32
    %c0_i32_0 = arith.constant 0 : i32
    return %arg0, %c0_i32 : i32, i32
  }
  func.func @transform_2(%arg0: i32) -> (i32, i32) {
    %c0_i32 = arith.constant 0 : i32
    %c0_i32_0 = arith.constant 0 : i32
    %c0_i32_1 = arith.constant 0 : i32
    return %c0_i32, %c0_i32_0 : i32, i32
  }
  func.func @transform_3(%arg0: i32) -> (i32, i32) {
    %c0_i32 = arith.constant 0 : i32
    %c0_i32_0 = arith.constant 0 : i32
    %c0_i32_1 = arith.constant 0 : i32
    return %c0_i32, %c0_i32_0 : i32, i32
  }
  func.func @transform_4(%arg0: i32) -> (i32, i32) {
    %c0_i32 = arith.constant 0 : i32
    %c0_i32_0 = arith.constant 0 : i32
    return %arg0, %c0_i32 : i32, i32
  }
  func.func @transform_5(%arg0: i32) -> (i32, i32) {
    %c0_i32 = arith.constant 0 : i32
    %c0_i32_0 = arith.constant 0 : i32
    return %arg0, %c0_i32 : i32, i32
  }
}

</mosaic_0001>

<bundles_post_ra>
// kernel: selfcf_forward.3
= control target key start
LH: loop header
LB: loop body
LE: loop exit
PB: predicated region body
PF: predicated region fallthrough
CT: control target
= control target key end

     0   :  { %v182_v0 = vmov 0.0   ;;  %vm183_vm0 = vmmov 0   ;;  %s277_s2 = inlined_call_operand.vmem [shape: f32[128,128], index: 2, kind: input, shape index: {}]   ;;  %s278_s0 = inlined_call_operand.vmem [shape: f32[8,128], index: 0, kind: input, shape index: {}]   ;;  %s279_s1 = inlined_call_operand.vmem [shape: f32[8,128], index: 1, kind: input, shape index: {}]   ;;  %s280_s5 = inlined_call_operand.vmem [shape: f32[8,128], index: 5, kind: output, shape index: {1}]   ;;  %s281_s3 = inlined_call_operand.vmem [shape: f32[1,128], index: 3, kind: input, shape index: {}]   ;;  %s282_s4 = inlined_call_operand.vmem [shape: f32[8,128], index: 4, kind: output, shape index: {0}]  }
   0x1   :  { %145 = vmatprep.subr.mxu0 %v182_v0  ;;  %v35_v1 = vld [vmem:[%s277_s2 + $0x78] sm:$0xff]  ;;  %v34_v2 = vld [vmem:[%s277_s2 + $0x70] sm:$0xff]  ;;  %177 = vmatprep.mubr.msk.f32.mxu0 %vm183_vm0, %v182_v0  ;;  %v33_v3 = vld [vmem:[%s277_s2 + $0x68] sm:$0xff] }
   0x2   :  { %146 = vmatpush3.msra.mxu0 %v35_v1  ;;  %v32_v4 = vld [vmem:[%s277_s2 + $0x60] sm:$0xff]  ;;  %v31_v7 = vld [vmem:[%s277_s2 + $0x58] sm:$0xff]  ;;  %v30_v10 = vld [vmem:[%s277_s2 + $0x50] sm:$0xff] }
   0x3   :  { %147 = vmatprep.subr.mxu0 %v182_v0  ;;  %v19_v5 = vld [vmem:[%s278_s0] sm:$0xff]  ;;  %v29_v12 = vld [vmem:[%s277_s2 + $0x48] sm:$0xff]  ;;  %v27_v14 = vld [vmem:[%s277_s2 + $0x38] sm:$0xff] }
   0x4   :  { %148 = vmatpush3.msra.mxu0 %v34_v2  ;;  %v114_v6 = vld [vmem:[%s279_s1] sm:$0xff]  ;;  %v116_v9 = vmul.f32 0.95, %v19_v5  ;;  %v26_v15 = vld [vmem:[%s277_s2 + $0x30] sm:$0xff]  ;;  %v25_v16 = vld [vmem:[%s277_s2 + $0x28] sm:$0xff] }
   0x5   :  { %149 = vmatprep.subr.mxu0 %v182_v0  ;;  %v115_v8 = vmul.f32 0.05, %v114_v6  ;;  %v28_v13 = vld [vmem:[%s277_s2 + $0x40] sm:$0xff]  ;;  %v23_v18 = vld [vmem:[%s277_s2 + $0x18] sm:$0xff]  ;;  %v22_v19 = vld [vmem:[%s277_s2 + $0x10] sm:$0xff] }
   0x6   :  { %150 = vmatpush3.msra.mxu0 %v33_v3  ;;  %v24_v17 = vld [vmem:[%s277_s2 + $0x20] sm:$0xff]  ;;  %v21_v20 = vld [vmem:[%s277_s2 + $0x8] sm:$0xff] }
   0x7   :  { %151 = vmatprep.subr.mxu0 %v182_v0  ;;  %v117_v11 = vadd.f32 %v116_v9, %v115_v8  ;;  %v20_v21 = vld [vmem:[%s277_s2] sm:$0xff] }
   0x8   :  { %152 = vmatpush3.msra.mxu0 %v32_v4  ;;  %v127_v22 = vld [vmem:[%s281_s3] ss:$0 sm:$0xff] }
   0x9   :  { %153 = vmatprep.subr.mxu0 %v182_v0  ;;  %118 = vst [vmem:[%s280_s5] sm:$0xff] %v117_v11 }
   0xa   :  { %154 = vmatpush3.msra.mxu0 %v31_v7 }
   0xb   :  { %155 = vmatprep.subr.mxu0 %v182_v0 }
   0xc   :  { %156 = vmatpush3.msra.mxu0 %v30_v10 }
   0xd   :  { %157 = vmatprep.subr.mxu0 %v182_v0 }
   0xe   :  { %158 = vmatpush3.msra.mxu0 %v29_v12 }
   0xf   :  { %159 = vmatprep.subr.mxu0 %v182_v0 }
  0x10   :  { %160 = vmatpush3.msra.mxu0 %v28_v13 }
  0x11   :  { %161 = vmatprep.subr.mxu0 %v182_v0 }
  0x12   :  { %162 = vmatpush3.msra.mxu0 %v27_v14 }
  0x13   :  { %163 = vmatprep.subr.mxu0 %v182_v0 }
  0x14   :  { %164 = vmatpush3.msra.mxu0 %v26_v15 }
  0x15   :  { %165 = vmatprep.subr.mxu0 %v182_v0 }
  0x16   :  { %166 = vmatpush3.msra.mxu0 %v25_v16 }
  0x17   :  { %167 = vmatprep.subr.mxu0 %v182_v0 }
  0x18   :  { %168 = vmatpush3.msra.mxu0 %v24_v17 }
  0x19   :  { %169 = vmatprep.subr.mxu0 %v182_v0 }
  0x1a   :  { %170 = vmatpush3.msra.mxu0 %v23_v18 }
  0x1b   :  { %171 = vmatprep.subr.mxu0 %v182_v0 }
  0x1c   :  { %172 = vmatpush3.msra.mxu0 %v22_v19 }
  0x1d   :  { %173 = vmatprep.subr.mxu0 %v182_v0 }
  0x1e   :  { %174 = vmatpush3.msra.mxu0 %v21_v20 }
  0x1f   :  { %175 = vmatprep.subr.mxu0 %v182_v0 }
  0x20   :  { %176 = vmatpush3.msra.mxu0 %v20_v21 }
  0x21   :  { %178 = vmatmul.mubr.f32.vlgmr.msra.gmra.mxu0 %v19_v5 }
  0xe1   :  { %v109_v23 = vpop.f32.mrf.mxu0 }
  0xe2   :  { %v110_v24 = vadd.f32 %v127_v22, %v109_v23 }
  0xe3   :  { %v179_v25 = vpop.f32.mrf.mxu0 }
  0xe4   :  { %113 = vst [vmem:[%s282_s4] sm:$0xff] %v110_v24 }

// kernel: selfcf_forward.2
= control target key start
LH: loop header
LB: loop body
LE: loop exit
PB: predicated region body
PF: predicated region fallthrough
CT: control target
= control target key end

     0   :  { %s949_s0 = inlined_call_operand.<no memory space> [shape: s32[1], index: 0, kind: input, shape index: {}]   ;;  %s950_s1 = inlined_call_operand.<no memory space> [shape: s32[1], index: 1, kind: input, shape index: {}]   ;;  %s951_s2 = inlined_call_operand.<no memory space> [shape: s32[1], index: 2, kind: input, shape index: {}]   ;;  %s952_s3 = inlined_call_operand.<no memory space> [shape: s32[1], index: 3, kind: input, shape index: {}]   ;;  %s953_s4 = inlined_call_operand.vmem [shape: bf16[1,128,128], index: 4, kind: input, shape index: {}]   ;;  %s954_s5 = inlined_call_operand.vmem [shape: bf16[128,128], index: 5, kind: input, shape index: {}]   ;;  %s955_s6 = inlined_call_operand.vmem [shape: f32[128,128], index: 6, kind: input, shape index: {}]   ;;  %s956_s7 = inlined_call_operand.vmem [shape: f32[128,128], index: 7, kind: output, shape index: {0}]   ;;  %s957_s8 = inlined_call_operand.hbm [shape: bf16[128,128], index: 8, kind: output, shape index: {1}]  }
   0x1   :  { %14 = sst [smem:[#allocation4]] %s949_s0 }
   0x2   :  { %17 = sst [smem:[#allocation7]] %s952_s3 }
   0x3   :  { %18 = vsyncpa [#allocation9], 0  ;;  %s45_s30 = sld [smem:[#allocation4]]  ;;  %p581_p1 = scmp.ne.s32.totalorder %s951_s2, 1 }
   0x9   :  { %s577_s9 = sshll.u32 %s45_s30, 4 }
   0xa   :  { %p47_p0 = scmp.lt.s32.totalorder %s577_s9, 15  ;;  %68 = sbr.rel (%p581_p1) target bundleno = 24 (0x18), region = 17 }
   0xc   :  { %s959_s9 = smov (!%p47_p0, %s577_s9), 15 }
   0xd   :  { %s578_s10 = sshll.u32 %s959_s9, 3 }
   0xe   :  { %s847_s13 = scalar_lea.vmem %s955_s6, %s578_s10  ;;  %s852_s16 = scalar_lea.vmem %s956_s7, %s578_s10 }
   0xf   :  { %v789_v0 = vmov 0.0  }
  0x10   :  { %69 = vst [vmem:[#allocation2 + $0x30] sm:$0xff] %v789_v0  ;;  %70 = vst [vmem:[#allocation2] sm:$0xff] %v789_v0 }
  0x11   :  { %71 = vst [vmem:[#allocation2 + $0x58] sm:$0xff] %v789_v0  ;;  %72 = vst [vmem:[#allocation2 + $0x18] sm:$0xff] %v789_v0 }
  0x12   :  { %73 = vst [vmem:[#allocation2 + $0x50] sm:$0xff] %v789_v0  ;;  %74 = vst [vmem:[#allocation2 + $0x68] sm:$0xff] %v789_v0 }
  0x13   :  { %75 = vst [vmem:[#allocation2 + $0x8] sm:$0xff] %v789_v0  ;;  %76 = vst [vmem:[#allocation2 + $0x48] sm:$0xff] %v789_v0 }
  0x14   :  { %77 = vst [vmem:[#allocation2 + $0x40] sm:$0xff] %v789_v0  ;;  %78 = vst [vmem:[#allocation2 + $0x20] sm:$0xff] %v789_v0 }
  0x15   :  { %79 = vst [vmem:[#allocation2 + $0x10] sm:$0xff] %v789_v0  ;;  %80 = vst [vmem:[#allocation2 + $0x38] sm:$0xff] %v789_v0 }
  0x16   :  { %81 = vst [vmem:[#allocation2 + $0x60] sm:$0xff] %v789_v0  ;;  %82 = vst [vmem:[#allocation2 + $0x70] sm:$0xff] %v789_v0 }
  0x17   :  { %83 = vst [vmem:[#allocation2 + $0x78] sm:$0xff] %v789_v0  ;;  %84 = vst [vmem:[#allocation2 + $0x28] sm:$0xff] %v789_v0 }
  0x18 PF:  { %v749_v1 = vld [vmem:[%s954_s5 + $0x38] sm:$0xff]   ;;  %v750_v2 = vld [vmem:[%s954_s5 + $0x30] sm:$0xff]   ;;  %v751_v3 = vld [vmem:[%s954_s5 + $0x28] sm:$0xff]   ;;  %s905_s19 = sld [smem:[#allocation7]] }
  0x19   :  { %697 = vmatprep.subr.bf16.mxu0 %v749_v1  ;;  %729 = vmatprep.subr.bf16.mxu1 %v749_v1  ;;  %v752_v4 = vld [vmem:[%s954_s5 + $0x20] sm:$0xff]   ;;  %v753_v7 = vld [vmem:[%s954_s5 + $0x18] sm:$0xff]   ;;  %v754_v8 = vld [vmem:[%s954_s5 + $0x10] sm:$0xff]  }
  0x1a   :  { %698 = vmatpush3.bf16.msra.mxu0 %v749_v1  ;;  %737 = vmatpush3.bf16.msra.mxu1 %v749_v1  ;;  %v757_v5 = vld [vmem:[%s953_s4] sm:$0xff]   ;;  %v755_v9 = vld [vmem:[%s954_s5 + $0x8] sm:$0xff]   ;;  %v761_v13 = vld [vmem:[%s953_s4 + $0x10] sm:$0xff]  }
  0x1b   :  { %699 = vmatprep.subr.bf16.mxu0 %v750_v2  ;;  %730 = vmatprep.subr.bf16.mxu1 %v750_v2  ;;  %v758_v6 = vld [vmem:[%s953_s4 + $0x20] sm:$0xff]   ;;  %v759_v11 = vld [vmem:[%s953_s4 + $0x8] sm:$0xff]   ;;  %v762_v14 = vld [vmem:[%s953_s4 + $0x30] sm:$0xff]  }
  0x1c   :  { %713 = vmatprep.mubr.bf16.mxu0 %v757_v5  ;;  %721 = vmatprep.mubr.bf16.mxu1 %v758_v6  ;;  %v756_v10 = vld [vmem:[%s954_s5] sm:$0xff]   ;;  %v760_v12 = vld [vmem:[%s953_s4 + $0x28] sm:$0xff]   ;;  %v763_v15 = vld [vmem:[%s953_s4 + $0x18] sm:$0xff]  }
  0x1d   :  { %v764_v16 = vld [vmem:[%s953_s4 + $0x38] sm:$0xff]   ;;  %v111_v18 = vld [vmem:[#allocation2 + $0x10] sm:$0xff]  ;;  %v109_v22 = vld [vmem:[#allocation2 + $0x40] sm:$0xff] }
  0x1e   :  { %700 = vmatpush3.bf16.msra.mxu0 %v750_v2  ;;  %738 = vmatpush3.bf16.msra.mxu1 %v750_v2  ;;  %v103_v17 = vld [vmem:[#allocation2 + $0x58] sm:$0xff]  ;;  %v101_v21 = vld [vmem:[#allocation2 + $0x30] sm:$0xff]  ;;  %v102_v33 = vld [vmem:[#allocation2] sm:$0xff]  ;;  %p598_p2 = scmp.ne.s32.totalorder %s905_s19, 1 }
  0x1f   :  { %701 = vmatprep.subr.bf16.mxu0 %v751_v3  ;;  %731 = vmatprep.subr.bf16.mxu1 %v751_v3  ;;  %v104_v27 = vld [vmem:[#allocation2 + $0x18] sm:$0xff]  ;;  %v110_v34 = vld [vmem:[#allocation2 + $0x20] sm:$0xff]  ;;  %v107_v39 = vld [vmem:[#allocation2 + $0x8] sm:$0xff] }
  0x20   :  { %v112_v28 = vld [vmem:[#allocation2 + $0x38] sm:$0xff]  ;;  %v105_v45 = vld [vmem:[#allocation2 + $0x50] sm:$0xff]  ;;  %v113_v46 = vld [vmem:[#allocation2 + $0x60] sm:$0xff] }
  0x21   :  { %v115_v40 = vld [vmem:[#allocation2 + $0x78] sm:$0xff]  ;;  %v108_v51 = vld [vmem:[#allocation2 + $0x48] sm:$0xff]  ;;  %v114_v58 = vld [vmem:[#allocation2 + $0x70] sm:$0xff] }
  0x22   :  { %702 = vmatpush3.bf16.msra.mxu0 %v751_v3  ;;  %739 = vmatpush3.bf16.msra.mxu1 %v751_v3  ;;  %v116_v52 = vld [vmem:[#allocation2 + $0x28] sm:$0xff] }
  0x23   :  { %703 = vmatprep.subr.bf16.mxu0 %v752_v4  ;;  %732 = vmatprep.subr.bf16.mxu1 %v752_v4  ;;  %v106_v57 = vld [vmem:[#allocation2 + $0x68] sm:$0xff] }
  0x26   :  { %704 = vmatpush3.bf16.msra.mxu0 %v752_v4  ;;  %740 = vmatpush3.bf16.msra.mxu1 %v752_v4 }
  0x27   :  { %705 = vmatprep.subr.bf16.mxu0 %v753_v7  ;;  %733 = vmatprep.subr.bf16.mxu1 %v753_v7 }
  0x2a   :  { %706 = vmatpush3.bf16.msra.mxu0 %v753_v7  ;;  %741 = vmatpush3.bf16.msra.mxu1 %v753_v7 }
  0x2b   :  { %707 = vmatprep.subr.bf16.mxu0 %v754_v8  ;;  %734 = vmatprep.subr.bf16.mxu1 %v754_v8 }
  0x2e   :  { %708 = vmatpush3.bf16.msra.mxu0 %v754_v8  ;;  %742 = vmatpush3.bf16.msra.mxu1 %v754_v8 }
  0x2f   :  { %709 = vmatprep.subr.bf16.mxu0 %v755_v9  ;;  %735 = vmatprep.subr.bf16.mxu1 %v755_v9 }
  0x32   :  { %710 = vmatpush3.bf16.msra.mxu0 %v755_v9  ;;  %743 = vmatpush3.bf16.msra.mxu1 %v755_v9 }
  0x33   :  { %711 = vmatprep.subr.bf16.mxu0 %v756_v10  ;;  %736 = vmatprep.subr.bf16.mxu1 %v756_v10 }
  0x36   :  { %712 = vmatpush3.bf16.msra.mxu0 %v756_v10  ;;  %744 = vmatpush3.bf16.msra.mxu1 %v756_v10 }
  0x39   :  { %714 = vmatmul.mubr.bf16.vlgmr.msra.gmra.mxu0 %v759_v11  ;;  %722 = vmatmul.mubr.bf16.vlgmr.msra.gmra.mxu1 %v760_v12 }
  0x3a   :  { %717 = vmatprep.mubr.bf16.mxu0 %v761_v13  ;;  %725 = vmatprep.mubr.bf16.mxu1 %v762_v14 }
  0x41   :  { %718 = vmatmul.mubr.bf16.gmra.mxu0 %v763_v15  ;;  %726 = vmatmul.mubr.bf16.gmra.mxu1 %v764_v16 }
  0xf9   :  { %v715_v19 = vpop.f32.mrf.mxu0  ;;  %v723_v20 = vpop.f32.mrf.mxu1 }
  0xfa   :  { %v328_v23 = vadd.f32 %v715_v19, %v103_v17  ;;  %v336_v24 = vadd.f32 %v723_v20, %v111_v18 }
  0xfb   :  { %v263_v25 = vpop.f32.mrf.mxu0  ;;  %v295_v26 = vpop.f32.mrf.mxu1 }
  0xfc   :  { %344 = vst [vmem:[#allocation2 + $0x58] sm:$0xff] %v328_v23  ;;  %352 = vst [vmem:[#allocation2 + $0x10] sm:$0xff] %v336_v24  ;;  %v326_v29 = vadd.f32 %v263_v25, %v101_v21  ;;  %v334_v30 = vadd.f32 %v295_v26, %v109_v22 }
  0xfd   :  { %v716_v31 = vpop.f32.mrf.mxu0  ;;  %v724_v32 = vpop.f32.mrf.mxu1 }
  0xfe   :  { %342 = vst [vmem:[#allocation2 + $0x30] sm:$0xff] %v326_v29  ;;  %350 = vst [vmem:[#allocation2 + $0x40] sm:$0xff] %v334_v30  ;;  %v329_v35 = vadd.f32 %v716_v31, %v104_v27  ;;  %v337_v36 = vadd.f32 %v724_v32, %v112_v28 }
  0xff   :  { %v266_v37 = vpop.f32.mrf.mxu0  ;;  %v298_v38 = vpop.f32.mrf.mxu1 }
 0x100   :  { %345 = vst [vmem:[#allocation2 + $0x18] sm:$0xff] %v329_v35  ;;  %353 = vst [vmem:[#allocation2 + $0x38] sm:$0xff] %v337_v36  ;;  %v327_v41 = vadd.f32 %v266_v37, %v102_v33  ;;  %v335_v42 = vadd.f32 %v298_v38, %v110_v34 }
 0x101   :  { %v719_v43 = vpop.f32.mrf.mxu0  ;;  %v727_v44 = vpop.f32.mrf.mxu1 }
 0x102   :  { %343 = vst [vmem:[#allocation2] sm:$0xff] %v327_v41  ;;  %351 = vst [vmem:[#allocation2 + $0x20] sm:$0xff] %v335_v42  ;;  %v332_v47 = vadd.f32 %v719_v43, %v107_v39  ;;  %v340_v48 = vadd.f32 %v727_v44, %v115_v40 }
 0x103   :  { %v279_v49 = vpop.f32.mrf.mxu0  ;;  %v311_v50 = vpop.f32.mrf.mxu1 }
 0x104   :  { %348 = vst [vmem:[#allocation2 + $0x8] sm:$0xff] %v332_v47  ;;  %356 = vst [vmem:[#allocation2 + $0x78] sm:$0xff] %v340_v48  ;;  %v330_v53 = vadd.f32 %v279_v49, %v105_v45  ;;  %v338_v54 = vadd.f32 %v311_v50, %v113_v46 }
 0x105   :  { %v720_v55 = vpop.f32.mrf.mxu0  ;;  %v728_v56 = vpop.f32.mrf.mxu1 }
 0x106   :  { %346 = vst [vmem:[#allocation2 + $0x50] sm:$0xff] %v330_v53  ;;  %354 = vst [vmem:[#allocation2 + $0x60] sm:$0xff] %v338_v54  ;;  %v333_v59 = vadd.f32 %v720_v55, %v108_v51  ;;  %v341_v60 = vadd.f32 %v728_v56, %v116_v52  ;;  %362 = sbr.rel (%p598_p2) target bundleno = 284 (0x11c), region = 21 }
 0x107   :  { %v282_v61 = vpop.f32.mrf.mxu0  ;;  %v314_v62 = vpop.f32.mrf.mxu1 }
 0x108   :  { %349 = vst [vmem:[#allocation2 + $0x48] sm:$0xff] %v333_v59  ;;  %357 = vst [vmem:[#allocation2 + $0x28] sm:$0xff] %v341_v60  ;;  %v331_v63 = vadd.f32 %v282_v61, %v106_v57  ;;  %v339_v0 = vadd.f32 %v314_v62, %v114_v58 }
 0x10a   :  { %347 = vst [vmem:[#allocation2 + $0x68] sm:$0xff] %v331_v63  ;;  %355 = vst [vmem:[#allocation2 + $0x70] sm:$0xff] %v339_v0 }
 0x10b   :  { %v363_v1 = vld [vmem:[%s847_s13] sm:$0xff]  ;;  %v379_v2 = vld [vmem:[#allocation2 + $0x30] sm:$0xff]  ;;  %v364_v3 = vld [vmem:[%s847_s13 + $0x8] sm:$0xff] }
 0x10c   :  { %v395_v4 = vadd.f32 %v379_v2, %v363_v1  ;;  %v380_v5 = vld [vmem:[#allocation2] sm:$0xff]  ;;  %v365_v6 = vld [vmem:[%s847_s13 + $0x10] sm:$0xff]  ;;  %v381_v7 = vld [vmem:[#allocation2 + $0x58] sm:$0xff] }
 0x10d   :  { %v396_v8 = vadd.f32 %v380_v5, %v364_v3  ;;  %v397_v9 = vadd.f32 %v381_v7, %v365_v6  ;;  %v366_v10 = vld [vmem:[%s847_s13 + $0x18] sm:$0xff]  ;;  %v367_v12 = vld [vmem:[%s847_s13 + $0x20] sm:$0xff]  ;;  %v637_v13 = vpack.c.bf16 %v380_v5, %v379_v2  ;;  %v383_v15 = vld [vmem:[#allocation2 + $0x50] sm:$0xff] }
 0x10e   :  { %v382_v11 = vld [vmem:[#allocation2 + $0x18] sm:$0xff]  ;;  %411 = vst [vmem:[%s852_s16] sm:$0xff] %v395_v4  ;;  %v368_v16 = vld [vmem:[%s847_s13 + $0x28] sm:$0xff]  ;;  %v399_v19 = vadd.f32 %v383_v15, %v367_v12  ;;  %v369_v21 = vld [vmem:[%s847_s13 + $0x30] sm:$0xff] }
 0x10f   :  { %v398_v14 = vadd.f32 %v382_v11, %v366_v10  ;;  %v642_v18 = vpack.c.bf16 %v382_v11, %v381_v7  ;;  %412 = vst [vmem:[%s852_s16 + $0x8] sm:$0xff] %v396_v8  ;;  %413 = vst [vmem:[%s852_s16 + $0x10] sm:$0xff] %v397_v9  ;;  %v385_v22 = vld [vmem:[#allocation2 + $0x8] sm:$0xff]  ;;  %v370_v23 = vld [vmem:[%s847_s13 + $0x38] sm:$0xff] }
 0x110   :  { %638 = vst [vmem:[#allocation8] sm:$0xff] %v637_v13   ;;  %v401_v25 = vadd.f32 %v385_v22, %v369_v21  ;;  %v386_v26 = vld [vmem:[#allocation2 + $0x48] sm:$0xff]  ;;  %v371_v27 = vld [vmem:[%s847_s13 + $0x40] sm:$0xff]  ;;  %415 = vst [vmem:[%s852_s16 + $0x20] sm:$0xff] %v399_v19 }
 0x111   :  { %v384_v17 = vld [vmem:[#allocation2 + $0x68] sm:$0xff]  ;;  %414 = vst [vmem:[%s852_s16 + $0x18] sm:$0xff] %v398_v14  ;;  %v387_v28 = vld [vmem:[#allocation2 + $0x40] sm:$0xff]  ;;  %674 = vst [vmem:[#allocation8 + $0x8] sm:$0xff] %v642_v18   ;;  %v402_v29 = vadd.f32 %v386_v26, %v370_v23  ;;  %v652_v34 = vpack.c.bf16 %v386_v26, %v385_v22 }
 0x112   :  { %v400_v20 = vadd.f32 %v384_v17, %v368_v16  ;;  %v647_v24 = vpack.c.bf16 %v384_v17, %v383_v15  ;;  %v403_v30 = vadd.f32 %v387_v28, %v371_v27  ;;  %v372_v31 = vld [vmem:[%s847_s13 + $0x48] sm:$0xff]  ;;  %v388_v32 = vld [vmem:[#allocation2 + $0x20] sm:$0xff]  ;;  %v373_v33 = vld [vmem:[%s847_s13 + $0x50] sm:$0xff]  ;;  %417 = vst [vmem:[%s852_s16 + $0x30] sm:$0xff] %v401_v25 }
 0x113   :  { %v404_v35 = vadd.f32 %v388_v32, %v372_v31  ;;  %v389_v36 = vld [vmem:[#allocation2 + $0x10] sm:$0xff]  ;;  %v374_v37 = vld [vmem:[%s847_s13 + $0x58] sm:$0xff]  ;;  %v657_v39 = vpack.c.bf16 %v388_v32, %v387_v28  ;;  %418 = vst [vmem:[%s852_s16 + $0x38] sm:$0xff] %v402_v29  ;;  %v375_v42 = vld [vmem:[%s847_s13 + $0x60] sm:$0xff] }
 0x114   :  { %416 = vst [vmem:[%s852_s16 + $0x28] sm:$0xff] %v400_v20  ;;  %675 = vst [vmem:[#allocation8 + $0x10] sm:$0xff] %v647_v24   ;;  %v390_v38 = vld [vmem:[#allocation2 + $0x38] sm:$0xff]  ;;  %v405_v40 = vadd.f32 %v389_v36, %v373_v33  ;;  %v391_v43 = vld [vmem:[#allocation2 + $0x60] sm:$0xff] }
 0x115   :  { %419 = vst [vmem:[%s852_s16 + $0x40] sm:$0xff] %v403_v30  ;;  %v406_v41 = vadd.f32 %v390_v38, %v374_v37  ;;  %v376_v44 = vld [vmem:[%s847_s13 + $0x68] sm:$0xff]  ;;  %676 = vst [vmem:[#allocation8 + $0x18] sm:$0xff] %v652_v34   ;;  %v662_v45 = vpack.c.bf16 %v390_v38, %v389_v36  ;;  %v407_v46 = vadd.f32 %v391_v43, %v375_v42  ;;  %v392_v47 = vld [vmem:[#allocation2 + $0x70] sm:$0xff] }
 0x116   :  { %420 = vst [vmem:[%s852_s16 + $0x48] sm:$0xff] %v404_v35  ;;  %v377_v48 = vld [vmem:[%s847_s13 + $0x70] sm:$0xff]  ;;  %v393_v49 = vld [vmem:[#allocation2 + $0x78] sm:$0xff]  ;;  %677 = vst [vmem:[#allocation8 + $0x20] sm:$0xff] %v657_v39   ;;  %v408_v50 = vadd.f32 %v392_v47, %v376_v44  ;;  %v667_v54 = vpack.c.bf16 %v392_v47, %v391_v43 }
 0x117   :  { %421 = vst [vmem:[%s852_s16 + $0x50] sm:$0xff] %v405_v40  ;;  %422 = vst [vmem:[%s852_s16 + $0x58] sm:$0xff] %v406_v41  ;;  %v409_v51 = vadd.f32 %v393_v49, %v377_v48  ;;  %v378_v52 = vld [vmem:[%s847_s13 + $0x78] sm:$0xff]  ;;  %v394_v53 = vld [vmem:[#allocation2 + $0x28] sm:$0xff] }
 0x118   :  { %678 = vst [vmem:[#allocation8 + $0x28] sm:$0xff] %v662_v45   ;;  %423 = vst [vmem:[%s852_s16 + $0x60] sm:$0xff] %v407_v46  ;;  %v410_v55 = vadd.f32 %v394_v53, %v378_v52  ;;  %v672_v56 = vpack.c.bf16 %v394_v53, %v393_v49 }
 0x119   :  { %424 = vst [vmem:[%s852_s16 + $0x68] sm:$0xff] %v408_v50  ;;  %425 = vst [vmem:[%s852_s16 + $0x70] sm:$0xff] %v409_v51 }
 0x11a   :  { %679 = vst [vmem:[#allocation8 + $0x30] sm:$0xff] %v667_v54   ;;  %426 = vst [vmem:[%s852_s16 + $0x78] sm:$0xff] %v410_v55 }
 0x11b   :  { %680 = vst [vmem:[#allocation8 + $0x38] sm:$0xff] %v672_v56  }
 0x11c PF:  { %s535_s4 = sld [smem:[#allocation4]]  ;;  %s790_s20 = smov [#allocation8]  }
 0x11d   :  { %s542_s21 = sshll.u32 %s790_s20, 4  ;;  %s543_s21 = int_to_ptr.vmem [resolvable:$true] %s542_s21 }
 0x11e   :  { %s765_s25 = scalar_lea.vmem %s543_s21, 1024  ;;  %p770_p4 = scmp.lt.s32.totalorder %s543_s21, %s543_s21 }
 0x11f   :  { %p766_p3 = scmp.ne.s32.totalorder %s543_s21, %s765_s25  ;;  %p771_p5 = scmp.lt.s32.totalorder %s765_s25, %s765_s25 }
 0x121   :  { %p772_p6 = por %p771_p5, %p770_p4 }
 0x122   :  { %s633_s22 = sshll.u32 %s535_s4, 10 }
 0x123   :  { %s541_s13 = scalar_lea.hbm %s957_s8, %s633_s22  ;;  %p773_p7 = pnand %p772_p6, %p766_p3 }
 0x125   :  { %776 = shalt.err (!%p773_p7)
}
 0x126   :  { %s777_s1 = scalar_lea.hbm %s541_s13, 1024  ;;  %s779_s27 = scalar_lea.hbm %s957_s8, 1024 }
 0x127   :  { %p778_p8 = scmp.ne.s32.totalorder %s541_s13, %s777_s1  ;;  %p780_p9 = scmp.lt.s32.totalorder %s541_s13, %s957_s8 }
 0x128   :  { %p781_p10 = scmp.lt.s32.totalorder %s779_s27, %s777_s1 }
 0x12a   :  { %p782_p11 = por %p781_p10, %p780_p9 }
 0x12c   :  { %p783_p12 = pnand %p782_p11, %p778_p8 }
 0x12e   :  { %786 = shalt.err (!%p783_p12)
}
 0x12f   :  { %s791_s30 = smov 64   ;;  %s792_s9 = smov 4  }
 0x130   :  { %548 = dma.vmem_to_hbm [thread:$0]  %s543_s21, 1024, %s541_s13, [#allocation9], %s791_s30, %s791_s30, %s792_s9  }
 0x131   :  { %787 = dma.done.wait [#allocation9], 1024  }
 0x132   :  { %788 = vsyncadd [#allocation9], 4294966272 }
 0x133   :  { %560 = vsyncpa [#allocation9], 1 }

</bundles_post_ra>
